<compile_context>
chip_gen: v6e
topology: v6e:2x2x1
jax: 0.10.0
libtpu: 0.0.40
codegen_flags: <defaults>
</compile_context>

<pallas_src>
import math
import functools

import jax
import jax.numpy as jnp
from jax import lax
from jax.experimental import pallas as pl
from jax.experimental.pallas import tpu as pltpu


# ----------------------------- Pallas kernels ------------------------------

def _linear_kernel(x_ref, w_ref, b_ref, o_ref):
    o_ref[...] = (jnp.dot(x_ref[...].astype(jnp.bfloat16), w_ref[...],
                          preferred_element_type=jnp.float32)
                  + b_ref[...]).astype(o_ref.dtype)


def linear_pallas(x2d, w, b, *, out_dtype=jnp.bfloat16, block_m=512):
    """(M,K)@(K,N)+b, tiled over M; bf16 MXU inputs, f32 accumulation."""
    M, K = x2d.shape
    Kw, Nc = w.shape
    assert K == Kw
    tm = M if M <= block_m else block_m
    cost = pl.CostEstimate(flops=2 * M * K * Nc, transcendentals=0,
                           bytes_accessed=2 * (M * K + K * Nc + M * Nc))
    return pl.pallas_call(
        _linear_kernel,
        out_shape=jax.ShapeDtypeStruct((M, Nc), out_dtype),
        grid=(pl.cdiv(M, tm),),
        in_specs=[pl.BlockSpec((tm, K), lambda i: (i, 0)),
                  pl.BlockSpec((K, Nc), lambda i: (0, 0)),
                  pl.BlockSpec((1, Nc), lambda i: (0, 0))],
        out_specs=pl.BlockSpec((tm, Nc), lambda i: (i, 0)),
        compiler_params=pltpu.CompilerParams(dimension_semantics=("parallel",)),
        cost_estimate=cost,
    )(x2d, w.astype(jnp.bfloat16), b.reshape(1, Nc).astype(jnp.float32))


def _linear2_kernel(x_ref, w1_ref, b1_ref, w2_ref, b2_ref, o1_ref, o2_ref):
    xb = x_ref[...].astype(jnp.bfloat16)
    o1_ref[...] = (jnp.dot(xb, w1_ref[...], preferred_element_type=jnp.float32)
                   + b1_ref[...]).astype(o1_ref.dtype)
    o2_ref[...] = (jnp.dot(xb, w2_ref[...], preferred_element_type=jnp.float32)
                   + b2_ref[...]).astype(o2_ref.dtype)


def linear2_pallas(x2d, w1, b1, w2, b2, *, block_m=512):
    """Two matmuls over the same x (q/k projection + 1x1 down): x read once."""
    M, K = x2d.shape
    N1, N2 = w1.shape[1], w2.shape[1]
    tm = M if M <= block_m else block_m
    return pl.pallas_call(
        _linear2_kernel,
        out_shape=(jax.ShapeDtypeStruct((M, N1), jnp.bfloat16),
                   jax.ShapeDtypeStruct((M, N2), jnp.bfloat16)),
        grid=(pl.cdiv(M, tm),),
        in_specs=[pl.BlockSpec((tm, K), lambda i: (i, 0)),
                  pl.BlockSpec((K, N1), lambda i: (0, 0)),
                  pl.BlockSpec((1, N1), lambda i: (0, 0)),
                  pl.BlockSpec((K, N2), lambda i: (0, 0)),
                  pl.BlockSpec((1, N2), lambda i: (0, 0))],
        out_specs=(pl.BlockSpec((tm, N1), lambda i: (i, 0)),
                   pl.BlockSpec((tm, N2), lambda i: (i, 0))),
        compiler_params=pltpu.CompilerParams(dimension_semantics=("parallel",)),
    )(x2d, w1.astype(jnp.bfloat16), b1.reshape(1, N1).astype(jnp.float32),
      w2.astype(jnp.bfloat16), b2.reshape(1, N2).astype(jnp.float32))


def _a1_kernel(qk_ref, o_ref, *, inter, num_subset, t_total, tb):
    """A1 = softmax(sum_t q_t k_t^T / sqrt(inter*T)): T-tiled reduction."""
    ti = pl.program_id(1)

    @pl.when(ti == 0)
    def _():
        o_ref[...] = jnp.zeros_like(o_ref)

    need_mask = (t_total % tb) != 0
    if need_mask:                      # mask padded rows of a partial T-block
        v = qk_ref.shape[2]
        tloc = lax.broadcasted_iota(jnp.int32, (tb, v), 0) + ti * tb
        valid = (tloc < t_total)[:, :, None]

    for i in range(num_subset):
        q = qk_ref[0, :, :, i * inter:(i + 1) * inter]
        k = qk_ref[0, :, :, (num_subset + i) * inter:
                            (num_subset + i + 1) * inter]
        if need_mask:
            q = jnp.where(valid, q, jnp.zeros_like(q))
        s = jnp.einsum('tvd,twd->tvw', q, k,
                       preferred_element_type=jnp.float32)
        o_ref[0, i] += jnp.sum(s, axis=0)

    @pl.when(ti == pl.num_programs(1) - 1)
    def _():
        scale = 1.0 / math.sqrt(inter * t_total)   # full-T scale
        s = o_ref[...] * scale
        s = s - jnp.max(s, axis=-1, keepdims=True)
        e = jnp.exp(s)
        o_ref[...] = e / jnp.sum(e, axis=-1, keepdims=True)


def a1_pallas(qk, inter, num_subset=3, *, tb_cap=64):
    N, T, V, c6 = qk.shape
    TB = min(T, tb_cap)
    kern = functools.partial(_a1_kernel, inter=inter, num_subset=num_subset,
                             t_total=T, tb=TB)
    return pl.pallas_call(
        kern,
        out_shape=jax.ShapeDtypeStruct((N, num_subset, V, V), jnp.float32),
        grid=(N, pl.cdiv(T, TB)),
        in_specs=[pl.BlockSpec((1, TB, V, c6), lambda n, t: (n, t, 0, 0))],
        out_specs=pl.BlockSpec((1, num_subset, V, V),
                               lambda n, t: (n, 0, 0, 0)),
        compiler_params=pltpu.CompilerParams(
            dimension_semantics=("parallel", "arbitrary")),
    )(qk)


def _gcn_agg_kernel(w3_ref, abase_ref, qk_ref, x_ref, wd_ref, bd_ref, o_ref,
                    *, inter, num_subset):
    """Fused per time-block GCN:
       sum_i (A_base_i + w3*softmax(q_i k_i^T/sqrt(d))) @ x @ Wd_i + bias,
       with the three subset matmuls merged into one (TB*V,3C)@(3C,cout)."""
    tb, v, cin = x_ref.shape[1], x_ref.shape[2], x_ref.shape[3]
    scale = 1.0 / math.sqrt(inter)
    w3 = w3_ref[0]                                      # SMEM scalar
    xb = x_ref[0]                                       # (TB, V, C) bf16
    zs = []
    for i in range(num_subset):
        q = qk_ref[0, :, :, i * inter:(i + 1) * inter]
        k = qk_ref[0, :, :, (num_subset + i) * inter:
                            (num_subset + i + 1) * inter]
        s = jnp.einsum('tvd,twd->tvw', q, k,
                       preferred_element_type=jnp.float32) * scale
        s = s - jnp.max(s, axis=-1, keepdims=True)
        e = jnp.exp(s)
        a2 = e / jnp.sum(e, axis=-1, keepdims=True)     # (TB, V, V) f32
        a_in = abase_ref[0, i][None, :, :] + w3 * a2
        z = jnp.einsum('tvw,twc->tvc', a_in.astype(jnp.bfloat16), xb,
                       preferred_element_type=jnp.float32)
        zs.append(z.astype(jnp.bfloat16))
    zcat = jnp.concatenate(zs, axis=-1).reshape(tb * v, num_subset * cin)
    out = jnp.dot(zcat, wd_ref[...],
                  preferred_element_type=jnp.float32) + bd_ref[...]
    o_ref[0] = out.astype(o_ref.dtype)                  # (TB*V, cout), lane-dense


def gcn_agg_pallas(qk, x, a_base, w3, w_d, b_d, inter, *, tb_cap=64):
    N, T, V, C = x.shape
    ns = a_base.shape[1]
    cout = w_d.shape[-1]
    c6 = qk.shape[-1]
    TB = min(T, tb_cap)
    wd2 = w_d.reshape(ns * C, cout).astype(jnp.bfloat16)   # stacked [Wd0;Wd1;Wd2]
    kern = functools.partial(_gcn_agg_kernel, inter=inter, num_subset=ns)
    y = pl.pallas_call(
        kern,
        out_shape=jax.ShapeDtypeStruct((N, T * V, cout), jnp.bfloat16),
        grid=(N, pl.cdiv(T, TB)),
        in_specs=[
            pl.BlockSpec(memory_space=pltpu.MemorySpace.SMEM),          # w3
            pl.BlockSpec((1, ns, V, V), lambda n, t: (n, 0, 0, 0)),     # A_base
            pl.BlockSpec((1, TB, V, c6), lambda n, t: (n, t, 0, 0)),    # q|k
            pl.BlockSpec((1, TB, V, C), lambda n, t: (n, t, 0, 0)),     # x
            pl.BlockSpec((ns * C, cout), lambda n, t: (0, 0)),          # Wd stack
            pl.BlockSpec((1, cout), lambda n, t: (0, 0)),               # bias sum
        ],
        out_specs=pl.BlockSpec((1, TB * V, cout), lambda n, t: (n, t, 0)),
        compiler_params=pltpu.CompilerParams(
            dimension_semantics=("parallel", "parallel")),
    )(w3.reshape(1).astype(jnp.float32), a_base, qk,
      x.astype(jnp.bfloat16), wd2, b_d.reshape(1, cout).astype(jnp.float32))
    return y.reshape(N, T, V, cout)


def _tcn_kernel(x_ref, h_ref, w_ref, b_ref, o_ref, *, ksize, stride, tb_out):
    """Temporal conv (ksize,1): in-kernel tap loop on a halo'd time block."""
    v, cin = x_ref.shape[2], x_ref.shape[3]
    cout = o_ref.shape[2]
    xc = jnp.concatenate([x_ref[0], h_ref[0]], axis=0)   # (TB_in + halo, V, C)
    if stride > 1:                                        # even/odd phase split
        L = xc.shape[0]
        xph = xc.reshape(L // stride, stride, v, cin)
        phases = [xph[:, ph] for ph in range(stride)]
    else:
        phases = [xc]
    acc = jnp.zeros((tb_out * v, cout), jnp.float32)
    for k in range(ksize):
        xs = phases[k % stride][k // stride: k // stride + tb_out]
        acc = acc + jnp.dot(xs.reshape(tb_out * v, cin), w_ref[k],
                            preferred_element_type=jnp.float32)
    o_ref[0] = (acc + b_ref[...]).astype(o_ref.dtype)


# --------------------------------- glue ------------------------------------

def batchnorm(x, weight, bias, axes, eps=1e-5):
    # Training-mode BatchNorm (batch statistics, biased variance), f32 math.
    # TODO(synk): running-stat updates (side effects) are not modeled; they do
    # not affect the training-mode forward output.
    xf = x.astype(jnp.float32)
    mean = jnp.mean(xf, axis=axes, keepdims=True)
    var = jnp.mean(jnp.square(xf - mean), axis=axes, keepdims=True)
    return (xf - mean) * lax.rsqrt(var + eps) * weight + bias


def unit_gcn_apply(x, A, p, cout, num_subset=3):
    N, T, V, C = x.shape
    inter = cout // 4
    PA = jax.nn.softmax(p['PA'], axis=-1)
    wA = p['weight_A']
    A_all = wA[0] * A + wA[1] * PA                       # (S, V, V)

    x2d = x.reshape(-1, C)
    if 'down_w' in p:                                    # x read from HBM once
        qk2d, down2d = linear2_pallas(x2d, p['w_qk'], p['b_qk'],
                                      p['down_w'], p['down_b'])
        down = down2d.reshape(N, T, V, cout)
    else:
        qk2d = linear_pallas(x2d, p['w_qk'], p['b_qk'])
        down = None
    qk = qk2d.reshape(N, T, V, 2 * num_subset * inter)   # bf16

    A1 = a1_pallas(qk, inter, num_subset)                # (N,S,V,V) f32
    a_base = A_all[None] + wA[2] * A1                    # tiny, XLA
    y = gcn_agg_pallas(qk, x, a_base, wA[3], p['w_d'], p['b_d'], inter)

    y = batchnorm(y, p['bn_w'], p['bn_b'], axes=(0, 1, 2))
    if down is not None:
        d = batchnorm(down, p['down_bn_w'], p['down_bn_b'], axes=(0, 1, 2))
    else:
        d = x                                            # identity (C == cout)
    return jax.nn.relu(y + d).astype(jnp.bfloat16)


def unit_tcn_apply(x, p, stride):
    N, T, V, C = x.shape
    ksize = p['ksize']
    cout = p['w'].shape[-1]
    if ksize == 1:
        # 1x1 conv (+ time subsample for stride 2) is just a linear layer.
        xs = x[:, ::stride] if stride > 1 else x
        T_out = xs.shape[1]
        y = linear_pallas(xs.reshape(-1, C), p['w'][0], p['b'])
        y = y.reshape(N, T_out, V, cout)
    else:
        pad = (ksize - 1) // 2
        T_out = (T + 2 * pad - ksize) // stride + 1
        TB_out = min(T_out, 64)
        n_tb = pl.cdiv(T_out, TB_out)
        TB_in = TB_out * stride
        halo = ((ksize - stride + stride - 1) // stride) * stride  # 8 for k=9
        T_padded = n_tb * TB_in + halo
        right = T_padded - T - pad
        assert right >= 0
        xp = jnp.pad(x, ((0, 0), (pad, right), (0, 0), (0, 0)))
        # Halo rows per time-block, packed as (N, n_tb*halo, V, C) so the
        # kernel needs only non-overlapping Blocked windows.
        halos = jnp.stack(
            [xp[:, (tb + 1) * TB_in:(tb + 1) * TB_in + halo]
             for tb in range(n_tb)], axis=1).reshape(N, n_tb * halo, V, C)
        kern = functools.partial(_tcn_kernel, ksize=ksize, stride=stride,
                                 tb_out=TB_out)
        y = pl.pallas_call(
            kern,
            out_shape=jax.ShapeDtypeStruct((N, T_out * V, cout), jnp.bfloat16),
            grid=(N, n_tb),
            in_specs=[pl.BlockSpec((1, TB_in, V, C), lambda n, t: (n, t, 0, 0)),
                      pl.BlockSpec((1, halo, V, C), lambda n, t: (n, t, 0, 0)),
                      pl.BlockSpec((ksize, C, cout), lambda n, t: (0, 0, 0)),
                      pl.BlockSpec((1, cout), lambda n, t: (0, 0))],
            out_specs=pl.BlockSpec((1, TB_out * V, cout), lambda n, t: (n, t, 0)),
            compiler_params=pltpu.CompilerParams(
                dimension_semantics=("parallel", "parallel")),
        )(xp, halos, p['w'].astype(jnp.bfloat16),
          p['b'].reshape(1, cout).astype(jnp.float32))
        y = y.reshape(N, T_out, V, cout)
    return batchnorm(y, p['bn_w'], p['bn_b'], axes=(0, 1, 2))


def tcn_gcn_unit_apply(x, A, p):
    gx = unit_gcn_apply(x, A, p['gcn'], p['cout'])
    tx = unit_tcn_apply(gx, p['tcn'], p['stride'])
    if p['res'] == 'none':
        r = 0.0
    elif p['res'] == 'identity':
        r = x
    else:
        r = unit_tcn_apply(x, p['res_tcn'], p['stride'])
    return jax.nn.relu(tx + r).astype(jnp.bfloat16)


def p_coarsen(x, s):
    # Direct contraction over V, C stays on the lane axis (tiny, XLA).
    return jnp.einsum('ntvc,vu->ntuc', x.astype(jnp.float32),
                      s).astype(jnp.bfloat16)


def p_coarsen_A(A, s):
    return jnp.einsum('vw,svu,uz->swz', s, A, s)


# ----------------------------- parameter init ------------------------------

def _split(key, n):
    return list(jax.random.split(key, n))


def init_linear_params(key, cin, cout):
    kw, kb = jax.random.split(key)
    bound = 1.0 / math.sqrt(cin)
    w = jax.random.uniform(kw, (cin, cout), jnp.float32, -bound, bound)
    b = jax.random.uniform(kb, (cout,), jnp.float32, -bound, bound)
    return w, b


def init_gcn_params(key, cin, cout, V, num_subset=3):
    inter = cout // 4
    keys = _split(key, num_subset * 3 + 1)
    wq, bq, wk, bk, wd, bd = [], [], [], [], [], []
    idx = 0
    for _ in range(num_subset):
        w_, b_ = init_linear_params(keys[idx], cin, inter); idx += 1
        wq.append(w_); bq.append(b_)
        w_, b_ = init_linear_params(keys[idx], cin, inter); idx += 1
        wk.append(w_); bk.append(b_)
        w_, b_ = init_linear_params(keys[idx], cin, cout); idx += 1
        wd.append(w_); bd.append(b_)
    p = {'PA': jnp.full((num_subset, V, V), 1e-6, jnp.float32),
         'weight_A': jnp.array([0.25, 0.25, 0.25, 0.25], jnp.float32),
         # fused q/k projections: [q_0,q_1,q_2,k_0,k_1,k_2] along output dim
         'w_qk': jnp.concatenate(wq + wk, axis=1),
         'b_qk': jnp.concatenate(bq + bk, axis=0),
         # stacked conv_d weights; biases summed (subset outputs are summed)
         'w_d': jnp.stack(wd, axis=0),
         'b_d': jnp.sum(jnp.stack(bd, axis=0), axis=0),
         'bn_w': jnp.full((cout,), 1e-6, jnp.float32),   # bn_init(self.bn,1e-6)
         'bn_b': jnp.zeros((cout,), jnp.float32)}
    if cin != cout:
        std = math.sqrt(2.0 / cout)                      # kaiming fan_out, 1x1
        p['down_w'] = std * jax.random.normal(keys[idx], (cin, cout),
                                              jnp.float32)
        p['down_b'] = jnp.zeros((cout,), jnp.float32)
        p['down_bn_w'] = jnp.ones((cout,), jnp.float32)
        p['down_bn_b'] = jnp.zeros((cout,), jnp.float32)
    return p


def init_tcn_params(key, cin, cout, ksize):
    std = math.sqrt(2.0 / (cout * ksize))                # kaiming fan_out
    w = std * jax.random.normal(key, (ksize, cin, cout), jnp.float32)
    return {'w': w, 'b': jnp.zeros((cout,), jnp.float32),
            'bn_w': jnp.ones((cout,), jnp.float32),
            'bn_b': jnp.zeros((cout,), jnp.float32),
            'ksize': ksize}


def init_unit_params(key, cin, cout, V, stride=1, residual=True):
    k1, k2, k3 = jax.random.split(key, 3)
    p = {'gcn': init_gcn_params(k1, cin, cout, V),
         'tcn': init_tcn_params(k2, cout, cout, 9),
         'stride': stride, 'cin': cin, 'cout': cout}
    if not residual:
        p['res'] = 'none'
    elif cin == cout and stride == 1:
        p['res'] = 'identity'
    else:
        p['res'] = 'tcn'
        p['res_tcn'] = init_tcn_params(k3, cin, cout, 1)
    return p


def init_agcn_params(key, num_class, num_point, num_person, in_channels,
                     num_super_nodes):
    keys = _split(key, 32)
    V, Vs = num_point, num_super_nodes
    Cin0 = in_channels + V                               # add_idx=True
    p = {'PA': jnp.full((3, V, V), 1e-6, jnp.float32)}
    b0 = math.sqrt(6.0 / (V + Vs))
    p['S_0'] = jax.random.uniform(keys[0], (V, Vs), jnp.float32, -b0, b0)
    b1 = math.sqrt(6.0 / (Vs + 1))
    p['S_1'] = jax.random.uniform(keys[1], (Vs, 1), jnp.float32, -b1, b1)
    feat = num_person * Cin0 * V
    p['data_bn_w'] = jnp.ones((feat,), jnp.float32)
    p['data_bn_b'] = jnp.zeros((feat,), jnp.float32)
    cfgs = [
        ('l1', Cin0, 64, V, 1, False), ('l2', 64, 64, V, 1, True),
        ('l3', 64, 64, V, 1, True), ('l4', 64, 64, V, 1, True),
        ('l5', 64, 128, V, 2, True),
        ('l6_0', 128, 128, V, 1, True), ('l7_0', 128, 128, V, 1, True),
        ('l8_0', 128, 256, V, 2, True),
        ('l6_1', 128, 128, Vs, 1, True), ('l7_1', 128, 128, Vs, 1, True),
        ('l8_1', 128, 256, Vs, 2, True),
        ('l9_0', 256, 256, V, 1, True), ('l10_0', 256, 256, V, 1, True),
        ('l9_1', 256, 256, Vs, 1, True), ('l10_1', 256, 256, Vs, 1, True),
        ('l9_2', 256, 256, 1, 1, True), ('l10_2', 256, 256, 1, 1, True),
    ]
    ki = 2
    for name, ci, co, nv, st, res in cfgs:
        p[name] = init_unit_params(keys[ki], ci, co, nv, st, res)
        ki += 1
    std = math.sqrt(2.0 / num_class)
    p['fc_w'] = std * jax.random.normal(keys[ki], (256, num_class), jnp.float32)
    bound = 1.0 / math.sqrt(256.0)
    p['fc_b'] = jax.random.uniform(keys[ki + 1], (num_class,), jnp.float32,
                                   -bound, bound)
    return p


# ------------------------------- full forward -------------------------------

def agcn_forward(p, x):
    N, C, T, V, M = x.shape
    S_0 = jax.nn.softmax(p['S_0'], axis=0)
    S_1 = jax.nn.softmax(p['S_1'], axis=0)

    # add_and_bn (add_idx=True, add_before_bn=True), f32 statistics
    xr = jnp.transpose(x, (0, 4, 2, 3, 1)).reshape(N * M, T, V, C)
    I = jnp.eye(V, dtype=jnp.float32)
    xr = jnp.concatenate(
        [xr, jnp.broadcast_to(I[None, None], (N * M, T, V, V))], axis=-1)
    Cn = C + V
    x5 = xr.reshape(N, M, T, V, Cn)
    mean = jnp.mean(x5, axis=(0, 2), keepdims=True)
    var = jnp.mean(jnp.square(x5 - mean), axis=(0, 2), keepdims=True)
    w5 = p['data_bn_w'].reshape(1, M, 1, V, Cn)
    b5 = p['data_bn_b'].reshape(1, M, 1, V, Cn)
    x5 = (x5 - mean) * lax.rsqrt(var + 1e-5) * w5 + b5
    xk = x5.reshape(N * M, T, V, Cn).astype(jnp.bfloat16)

    A = jax.nn.softmax(p['PA'], axis=-1)                 # (3, V, V)

    xk = tcn_gcn_unit_apply(xk, A, p['l1'])
    xk = tcn_gcn_unit_apply(xk, A, p['l2'])
    xk = tcn_gcn_unit_apply(xk, A, p['l3'])
    xk = tcn_gcn_unit_apply(xk, A, p['l4'])
    xk = tcn_gcn_unit_apply(xk, A, p['l5'])

    x1 = p_coarsen(xk, S_0)
    A1 = p_coarsen_A(A, S_0)
    xk, x1 = (tcn_gcn_unit_apply(xk, A, p['l6_0']),
              tcn_gcn_unit_apply(x1, A1, p['l6_1']))
    xk, x1 = (tcn_gcn_unit_apply(xk, A, p['l7_0']),
              tcn_gcn_unit_apply(x1, A1, p['l7_1']))
    xk, x1 = (tcn_gcn_unit_apply(xk, A, p['l8_0']),
              tcn_gcn_unit_apply(x1, A1, p['l8_1']))

    x2 = p_coarsen(x1, S_1)
    A2 = p_coarsen_A(A1, S_1)
    xk, x1, x2 = (tcn_gcn_unit_apply(xk, A, p['l9_0']),
                  tcn_gcn_unit_apply(x1, A1, p['l9_1']),
                  tcn_gcn_unit_apply(x2, A2, p['l9_2']))
    xk, x1, x2 = (tcn_gcn_unit_apply(xk, A, p['l10_0']),
                  tcn_gcn_unit_apply(x1, A1, p['l10_1']),
                  tcn_gcn_unit_apply(x2, A2, p['l10_2']))

    xc = jnp.concatenate([xk, x1, x2], axis=-2)          # (N*M, T', Vtot, 256)
    Cf = xc.shape[-1]
    feat = jnp.mean(xc.astype(jnp.float32), axis=(1, 2)).reshape(N, M, Cf)
    feat = jnp.mean(feat, axis=1)                        # mean over person
    logits = linear_pallas(feat, p['fc_w'], p['fc_b'], out_dtype=jnp.float32)
    pretext = jnp.zeros((N, 1), jnp.float32)             # pretext_loss buffer
    return logits, pretext


# ----------------------------------- main -----------------------------------

if __name__ == "__main__":
    key = jax.random.PRNGKey(0)
    kp, kx = jax.random.split(key)

    # small config consistent with the module's constructor
    num_class, num_point, num_person, in_channels, num_super = 10, 5, 1, 3, 2
    N, T = 2, 8

    params = init_agcn_params(kp, num_class, num_point, num_person,
                              in_channels, num_super)
    # input layout matches PyTorch: (N, C, T, V, M)
    x = jax.random.normal(kx, (N, in_channels, T, num_point, num_person),
                          jnp.float32)

    logits, pretext = agcn_forward(params, x)
    (logits, pretext) = jax.block_until_ready((logits, pretext))
    assert logits.shape == (N, num_class)
    assert pretext.shape == (N, 1)
    assert bool(jnp.all(jnp.isfinite(logits)))
    print("KERNEL_OK")
</pallas_src>

<mosaic_0001>
module attributes {stable_mosaic.version = 11 : i64} {
  func.func @_linear2_kernel(%arg0: i32, %arg1: memref<80x8xbf16, #tpu.memory_space<vmem>>, %arg2: memref<8x96xbf16, #tpu.memory_space<vmem>>, %arg3: memref<1x96xf32, #tpu.memory_space<vmem>>, %arg4: memref<8x64xbf16, #tpu.memory_space<vmem>>, %arg5: memref<1x64xf32, #tpu.memory_space<vmem>>, %arg6: memref<80x96xbf16, #tpu.memory_space<vmem>>, %arg7: memref<80x64xbf16, #tpu.memory_space<vmem>>) attributes {dimension_semantics = [#tpu.dimension_semantics<parallel>], iteration_bounds = array<i64: 1>, scalar_prefetch = 0 : i64, scratch_operands = 0 : i64, tpu.core_type = #tpu.core_type<tc>, window_params = [{transform_indices = @transform_0, window_bounds = array<i64: 80, 8>}, {pipeline_mode = #tpu.pipeline_mode<synchronous>, transform_indices = @transform_1, window_bounds = array<i64: 8, 96>}, {pipeline_mode = #tpu.pipeline_mode<synchronous>, transform_indices = @transform_2, window_bounds = array<i64: 1, 96>}, {pipeline_mode = #tpu.pipeline_mode<synchronous>, transform_indices = @transform_3, window_bounds = array<i64: 8, 64>}, {pipeline_mode = #tpu.pipeline_mode<synchronous>, transform_indices = @transform_4, window_bounds = array<i64: 1, 64>}, {transform_indices = @transform_5, window_bounds = array<i64: 80, 96>}, {transform_indices = @transform_6, window_bounds = array<i64: 80, 64>}]} {
    %c0 = arith.constant 0 : index
    %c0_0 = arith.constant 0 : index
    %0 = vector.load %arg1[%c0, %c0_0] : memref<80x8xbf16, #tpu.memory_space<vmem>>, vector<80x8xbf16>
    %c0_1 = arith.constant 0 : index
    %c0_2 = arith.constant 0 : index
    %1 = vector.load %arg2[%c0_1, %c0_2] : memref<8x96xbf16, #tpu.memory_space<vmem>>, vector<8x96xbf16>
    %cst = arith.constant dense<0.000000e+00> : vector<80x96xf32>
    %2 = tpu.matmul %0, %1, %cst {dimension_numbers = #tpu.dot_dimension_numbers<[1], [0], [0], [1], [0, 0, 1, 1], [], []>} : vector<80x8xbf16>, vector<8x96xbf16>, vector<80x96xf32> -> vector<80x96xf32>
    %c0_3 = arith.constant 0 : index
    %c0_4 = arith.constant 0 : index
    %3 = vector.load %arg3[%c0_3, %c0_4] : memref<1x96xf32, #tpu.memory_space<vmem>>, vector<1x96xf32>
    %4 = vector.broadcast %3 : vector<1x96xf32> to vector<80x96xf32>
    %5 = arith.addf %2, %4 : vector<80x96xf32>
    %6 = arith.truncf %5 : vector<80x96xf32> to vector<80x96xbf16>
    %c0_5 = arith.constant 0 : index
    %c0_6 = arith.constant 0 : index
    %7 = vector.load %arg6[%c0_5, %c0_6] : memref<80x96xbf16, #tpu.memory_space<vmem>>, vector<80x96xbf16>
    tpu.vector_store %arg6[%c0_5, %c0_6], %6 {strides = array<i32>} : memref<80x96xbf16, #tpu.memory_space<vmem>>, vector<80x96xbf16>,
    %c0_7 = arith.constant 0 : index
    %c0_8 = arith.constant 0 : index
    %8 = vector.load %arg4[%c0_7, %c0_8] : memref<8x64xbf16, #tpu.memory_space<vmem>>, vector<8x64xbf16>
    %cst_9 = arith.constant dense<0.000000e+00> : vector<80x64xf32>
    %9 = tpu.matmul %0, %8, %cst_9 {dimension_numbers = #tpu.dot_dimension_numbers<[1], [0], [0], [1], [0, 0, 1, 1], [], []>} : vector<80x8xbf16>, vector<8x64xbf16>, vector<80x64xf32> -> vector<80x64xf32>
    %c0_10 = arith.constant 0 : index
    %c0_11 = arith.constant 0 : index
    %10 = vector.load %arg5[%c0_10, %c0_11] : memref<1x64xf32, #tpu.memory_space<vmem>>, vector<1x64xf32>
    %11 = vector.broadcast %10 : vector<1x64xf32> to vector<80x64xf32>
    %12 = arith.addf %9, %11 : vector<80x64xf32>
    %13 = arith.truncf %12 : vector<80x64xf32> to vector<80x64xbf16>
    %c0_12 = arith.constant 0 : index
    %c0_13 = arith.constant 0 : index
    %14 = vector.load %arg7[%c0_12, %c0_13] : memref<80x64xbf16, #tpu.memory_space<vmem>>, vector<80x64xbf16>
    tpu.vector_store %arg7[%c0_12, %c0_13], %13 {strides = array<i32>} : memref<80x64xbf16, #tpu.memory_space<vmem>>, vector<80x64xbf16>,
    return
  }
  func.func @transform_0(%arg0: i32) -> (i32, i32) {
    %c0_i32 = arith.constant 0 : i32
    %c0_i32_0 = arith.constant 0 : i32
    return %arg0, %c0_i32 : i32, i32
  }
  func.func @transform_1(%arg0: i32) -> (i32, i32) {
    %c0_i32 = arith.constant 0 : i32
    %c0_i32_0 = arith.constant 0 : i32
    %c0_i32_1 = arith.constant 0 : i32
    return %c0_i32, %c0_i32_0 : i32, i32
  }
  func.func @transform_2(%arg0: i32) -> (i32, i32) {
    %c0_i32 = arith.constant 0 : i32
    %c0_i32_0 = arith.constant 0 : i32
    %c0_i32_1 = arith.constant 0 : i32
    return %c0_i32, %c0_i32_0 : i32, i32
  }
  func.func @transform_3(%arg0: i32) -> (i32, i32) {
    %c0_i32 = arith.constant 0 : i32
    %c0_i32_0 = arith.constant 0 : i32
    %c0_i32_1 = arith.constant 0 : i32
    return %c0_i32, %c0_i32_0 : i32, i32
  }
  func.func @transform_4(%arg0: i32) -> (i32, i32) {
    %c0_i32 = arith.constant 0 : i32
    %c0_i32_0 = arith.constant 0 : i32
    %c0_i32_1 = arith.constant 0 : i32
    return %c0_i32, %c0_i32_0 : i32, i32
  }
  func.func @transform_5(%arg0: i32) -> (i32, i32) {
    %c0_i32 = arith.constant 0 : i32
    %c0_i32_0 = arith.constant 0 : i32
    return %arg0, %c0_i32 : i32, i32
  }
  func.func @transform_6(%arg0: i32) -> (i32, i32) {
    %c0_i32 = arith.constant 0 : i32
    %c0_i32_0 = arith.constant 0 : i32
    return %arg0, %c0_i32 : i32, i32
  }
}

</mosaic_0001>

<bundles_post_ra>
// kernel: tpu_custom_call.1
= control target key start
LH: loop header
LB: loop body
LE: loop exit
PB: predicated region body
PF: predicated region fallthrough
CT: control target
= control target key end

     0   :  { %vm83_vm0 = vcmask 1043456   ;;  %v511_v2 = vmov 0.0   ;;  %vm67_vm1 = vcmask 64512   ;;  %vm512_vm2 = vmmov 0   ;;  %s675_s0 = inlined_call_operand.vmem [shape: bf16[80,8], index: 0, kind: input, shape index: {}]   ;;  %s676_s1 = inlined_call_operand.vmem [shape: bf16[8,96], index: 1, kind: input, shape index: {}]   ;;  %s677_s2 = inlined_call_operand.vmem [shape: f32[1,96], index: 2, kind: input, shape index: {}]   ;;  %s678_s3 = inlined_call_operand.vmem [shape: bf16[8,64], index: 3, kind: input, shape index: {}]   ;;  %s679_s4 = inlined_call_operand.vmem [shape: f32[1,64], index: 4, kind: input, shape index: {}]   ;;  %s680_s5 = inlined_call_operand.hbm [shape: bf16[80,96], index: 5, kind: output, shape index: {0}]   ;;  %s681_s6 = inlined_call_operand.vmem [shape: bf16[80,64], index: 6, kind: output, shape index: {1}]  }
   0x1   :  { %v34_v0 = vld [vmem:[%s676_s1] sm:$0xf]  ;;  %435 = vmatprep.subr.bf16.mxu0 %v511_v2  ;;  %457 = vmatprep.subr.bf16.mxu1 %v511_v2 }
   0x2   :  { %v211_v1 = vld [vmem:[%s678_s3] sm:$0xf]  ;;  %v85_v3 = vsel %vm83_vm0, %v34_v0, 0  ;;  %437 = vmatprep.mubr.msk.bf16.mxu0 %vm512_vm2, %v511_v2  ;;  %459 = vmatprep.mubr.msk.bf16.mxu1 %vm512_vm2, %v511_v2 }
   0x3   :  { %v220_v4 = vsel %vm83_vm0, %v211_v1, 0  ;;  %v484_v5 = vld [vmem:[%s675_s0] sm:$0xff]   ;;  %436 = vmatpush3.bf16.msra.mxu0 %v85_v3 }
   0x4   :  { %458 = vmatpush3.bf16.msra.mxu1 %v220_v4 }
   0x6   :  { %438 = vmatmul.mubr.msk.bf16.vlgmr.msra.gmra.mxu0 %vm67_vm1, %v484_v5 }
   0x7   :  { %460 = vmatmul.mubr.msk.bf16.vlgmr.msra.gmra.mxu1 %vm67_vm1, %v484_v5  ;;  %441 = vmatprep.mubr.msk.bf16.mxu0 %vm512_vm2, %v511_v2 }
   0x8   :  { %463 = vmatprep.mubr.msk.bf16.mxu1 %vm512_vm2, %v511_v2 }
   0x9   :  { %12 = vsyncpa [#allocation3], 0  ;;  %v485_v6 = vld [vmem:[%s675_s0 + $0x8] sm:$0xff]   ;;  %v486_v7 = vld [vmem:[%s675_s0 + $0x10] sm:$0xff]   ;;  %vm200_vm3 = vcmask 781312   ;;  %vm335_vm4 = vcmask 519168  }
   0xa   :  { %v487_v8 = vld [vmem:[%s675_s0 + $0x18] sm:$0xff]   ;;  %v488_v9 = vld [vmem:[%s675_s0 + $0x20] sm:$0xff]   ;;  %s513_s26 = smov [#allocation2]  }
   0xb   :  { %v595_v10 = vld [vmem:[%s677_s2] ss:$0 sm:$0xff]  ;;  %s351_s1 = sshll.u32 %s513_s26, 4  ;;  %s352_s1 = int_to_ptr.vmem [resolvable:$true] %s351_s1 }
   0xc   :  { %v600_v11 = vld [vmem:[%s679_s4] ss:$0 sm:$0xff]  ;;  %s489_s30 = scalar_lea.vmem %s352_s1, 640  ;;  %p494_p1 = scmp.lt.s32.totalorder %s352_s1, %s352_s1 }
   0xd   :  { %p490_p0 = scmp.ne.s32.totalorder %s352_s1, %s489_s30  ;;  %p495_p2 = scmp.lt.s32.totalorder %s489_s30, %s489_s30 }
   0xe   :  { %442 = vmatmul.mubr.msk.bf16.gmra.mxu0 %vm67_vm1, %v485_v6 }
   0xf   :  { %464 = vmatmul.mubr.msk.bf16.gmra.mxu1 %vm67_vm1, %v485_v6  ;;  %445 = vmatprep.mubr.msk.bf16.mxu0 %vm512_vm2, %v511_v2  ;;  %p496_p3 = por %p495_p2, %p494_p1 }
  0x10   :  { %467 = vmatprep.mubr.msk.bf16.mxu1 %vm512_vm2, %v511_v2 }
  0x11   :  { %p497_p4 = pnand %p496_p3, %p490_p0 }
  0x16   :  { %446 = vmatmul.mubr.msk.bf16.gmra.mxu0 %vm67_vm1, %v486_v7 }
  0x17   :  { %468 = vmatmul.mubr.msk.bf16.gmra.mxu1 %vm67_vm1, %v486_v7  ;;  %449 = vmatprep.mubr.msk.bf16.mxu0 %vm512_vm2, %v511_v2 }
  0x18   :  { %471 = vmatprep.mubr.msk.bf16.mxu1 %vm512_vm2, %v511_v2 }
  0x1e   :  { %450 = vmatmul.mubr.msk.bf16.gmra.mxu0 %vm67_vm1, %v487_v8 }
  0x1f   :  { %472 = vmatmul.mubr.msk.bf16.gmra.mxu1 %vm67_vm1, %v487_v8  ;;  %453 = vmatprep.mubr.msk.bf16.mxu0 %vm512_vm2, %v511_v2 }
  0x20   :  { %475 = vmatprep.mubr.msk.bf16.mxu1 %vm512_vm2, %v511_v2 }
  0x26   :  { %454 = vmatmul.mubr.msk.bf16.gmra.mxu0 %vm67_vm1, %v488_v9 }
  0x27   :  { %476 = vmatmul.mubr.msk.bf16.gmra.mxu1 %vm67_vm1, %v488_v9 }
  0xc6   :  { %v121_v12 = vpop.f32.mrf.mxu0 }
  0xc7   :  { %v256_v13 = vpop.f32.mrf.mxu1  ;;  %v122_v14 = vadd.f32 %v595_v10, %v121_v12 }
  0xc8   :  { %v257_v15 = vadd.f32 %v600_v11, %v256_v13  ;;  %v439_v16 = vpop.f32.mrf.mxu0 }
  0xc9   :  { %v461_v17 = vpop.f32.mrf.mxu1  ;;  %v403_v18 = vpack.c.bf16 %v122_v14, %v122_v14 }
  0xca   :  { %v413_v19 = vpack.c.bf16 %v257_v15, %v257_v15  ;;  %v124_v20 = vpop.f32.mrf.mxu0 }
  0xcb   :  { %v259_v21 = vpop.f32.mrf.mxu1  ;;  %201 = vst.msk [vmem:[#allocation2] sm:$0xf] %vm200_vm3, %v403_v18  ;;  %v125_v22 = vadd.f32 %v595_v10, %v124_v20 }
  0xcc   :  { %336 = vst.msk [vmem:[%s681_s6] sm:$0xf] %vm335_vm4, %v413_v19  ;;  %v260_v23 = vadd.f32 %v600_v11, %v259_v21  ;;  %v440_v24 = vpop.f32.mrf.mxu0 }
  0xcd   :  { %v462_v25 = vpop.f32.mrf.mxu1  ;;  %v404_v26 = vpack.c.bf16 %v125_v22, %v125_v22 }
  0xce   :  { %v414_v27 = vpack.c.bf16 %v260_v23, %v260_v23  ;;  %v129_v28 = vpop.f32.mrf.mxu0 }
  0xcf   :  { %v264_v29 = vpop.f32.mrf.mxu1  ;;  %202 = vst.msk [vmem:[#allocation2 + $0x4] sm:$0xf] %vm200_vm3, %v404_v26  ;;  %v130_v30 = vadd.f32 %v595_v10, %v129_v28 }
  0xd0   :  { %337 = vst.msk [vmem:[%s681_s6 + $0x4] sm:$0xf] %vm335_vm4, %v414_v27  ;;  %v265_v31 = vadd.f32 %v600_v11, %v264_v29  ;;  %v443_v32 = vpop.f32.mrf.mxu0 }
  0xd1   :  { %v465_v33 = vpop.f32.mrf.mxu1  ;;  %v405_v34 = vpack.c.bf16 %v130_v30, %v130_v30 }
  0xd2   :  { %v415_v35 = vpack.c.bf16 %v265_v31, %v265_v31  ;;  %v132_v36 = vpop.f32.mrf.mxu0 }
  0xd3   :  { %v267_v37 = vpop.f32.mrf.mxu1  ;;  %203 = vst.msk [vmem:[#allocation2 + $0x8] sm:$0xf] %vm200_vm3, %v405_v34  ;;  %v133_v38 = vadd.f32 %v595_v10, %v132_v36 }
  0xd4   :  { %338 = vst.msk [vmem:[%s681_s6 + $0x8] sm:$0xf] %vm335_vm4, %v415_v35  ;;  %v268_v39 = vadd.f32 %v600_v11, %v267_v37  ;;  %v444_v40 = vpop.f32.mrf.mxu0 }
  0xd5   :  { %v466_v41 = vpop.f32.mrf.mxu1  ;;  %v406_v42 = vpack.c.bf16 %v133_v38, %v133_v38 }
  0xd6   :  { %v416_v43 = vpack.c.bf16 %v268_v39, %v268_v39  ;;  %v137_v44 = vpop.f32.mrf.mxu0 }
  0xd7   :  { %v272_v45 = vpop.f32.mrf.mxu1  ;;  %204 = vst.msk [vmem:[#allocation2 + $0xc] sm:$0xf] %vm200_vm3, %v406_v42  ;;  %v138_v46 = vadd.f32 %v595_v10, %v137_v44 }
  0xd8   :  { %339 = vst.msk [vmem:[%s681_s6 + $0xc] sm:$0xf] %vm335_vm4, %v416_v43  ;;  %v273_v47 = vadd.f32 %v600_v11, %v272_v45  ;;  %v447_v48 = vpop.f32.mrf.mxu0 }
  0xd9   :  { %v469_v49 = vpop.f32.mrf.mxu1  ;;  %v407_v50 = vpack.c.bf16 %v138_v46, %v138_v46 }
  0xda   :  { %v417_v51 = vpack.c.bf16 %v273_v47, %v273_v47  ;;  %v140_v52 = vpop.f32.mrf.mxu0 }
  0xdb   :  { %v275_v53 = vpop.f32.mrf.mxu1  ;;  %205 = vst.msk [vmem:[#allocation2 + $0x10] sm:$0xf] %vm200_vm3, %v407_v50  ;;  %v141_v54 = vadd.f32 %v595_v10, %v140_v52 }
  0xdc   :  { %340 = vst.msk [vmem:[%s681_s6 + $0x10] sm:$0xf] %vm335_vm4, %v417_v51  ;;  %v276_v55 = vadd.f32 %v600_v11, %v275_v53  ;;  %v448_v56 = vpop.f32.mrf.mxu0 }
  0xdd   :  { %v470_v57 = vpop.f32.mrf.mxu1  ;;  %v408_v58 = vpack.c.bf16 %v141_v54, %v141_v54 }
  0xde   :  { %v418_v59 = vpack.c.bf16 %v276_v55, %v276_v55  ;;  %v145_v60 = vpop.f32.mrf.mxu0 }
  0xdf   :  { %v280_v61 = vpop.f32.mrf.mxu1  ;;  %206 = vst.msk [vmem:[#allocation2 + $0x14] sm:$0xf] %vm200_vm3, %v408_v58  ;;  %v146_v62 = vadd.f32 %v595_v10, %v145_v60 }
  0xe0   :  { %341 = vst.msk [vmem:[%s681_s6 + $0x14] sm:$0xf] %vm335_vm4, %v418_v59  ;;  %v281_v63 = vadd.f32 %v600_v11, %v280_v61  ;;  %v451_v0 = vpop.f32.mrf.mxu0 }
  0xe1   :  { %v473_v1 = vpop.f32.mrf.mxu1  ;;  %v409_v2 = vpack.c.bf16 %v146_v62, %v146_v62 }
  0xe2   :  { %v419_v3 = vpack.c.bf16 %v281_v63, %v281_v63  ;;  %v148_v4 = vpop.f32.mrf.mxu0 }
  0xe3   :  { %v283_v5 = vpop.f32.mrf.mxu1  ;;  %207 = vst.msk [vmem:[#allocation2 + $0x18] sm:$0xf] %vm200_vm3, %v409_v2  ;;  %v149_v6 = vadd.f32 %v595_v10, %v148_v4 }
  0xe4   :  { %342 = vst.msk [vmem:[%s681_s6 + $0x18] sm:$0xf] %vm335_vm4, %v419_v3  ;;  %v284_v7 = vadd.f32 %v600_v11, %v283_v5  ;;  %v452_v8 = vpop.f32.mrf.mxu0 }
  0xe5   :  { %v474_v9 = vpop.f32.mrf.mxu1  ;;  %v410_v12 = vpack.c.bf16 %v149_v6, %v149_v6 }
  0xe6   :  { %v420_v13 = vpack.c.bf16 %v284_v7, %v284_v7  ;;  %v153_v14 = vpop.f32.mrf.mxu0 }
  0xe7   :  { %v288_v15 = vpop.f32.mrf.mxu1  ;;  %208 = vst.msk [vmem:[#allocation2 + $0x1c] sm:$0xf] %vm200_vm3, %v410_v12  ;;  %v154_v16 = vadd.f32 %v595_v10, %v153_v14 }
  0xe8   :  { %343 = vst.msk [vmem:[%s681_s6 + $0x1c] sm:$0xf] %vm335_vm4, %v420_v13  ;;  %v289_v17 = vadd.f32 %v600_v11, %v288_v15  ;;  %v455_v18 = vpop.f32.mrf.mxu0 }
  0xe9   :  { %v477_v19 = vpop.f32.mrf.mxu1  ;;  %v411_v20 = vpack.c.bf16 %v154_v16, %v154_v16 }
  0xea   :  { %v421_v21 = vpack.c.bf16 %v289_v17, %v289_v17  ;;  %v156_v22 = vpop.f32.mrf.mxu0 }
  0xeb   :  { %v291_v23 = vpop.f32.mrf.mxu1  ;;  %209 = vst.msk [vmem:[#allocation2 + $0x20] sm:$0xf] %vm200_vm3, %v411_v20  ;;  %v157_v24 = vadd.f32 %v595_v10, %v156_v22 }
  0xec   :  { %344 = vst.msk [vmem:[%s681_s6 + $0x20] sm:$0xf] %vm335_vm4, %v421_v21  ;;  %v292_v25 = vadd.f32 %v600_v11, %v291_v23  ;;  %v456_v26 = vpop.f32.mrf.mxu0 }
  0xed   :  { %v478_v27 = vpop.f32.mrf.mxu1  ;;  %v412_v28 = vpack.c.bf16 %v157_v24, %v157_v24 }
  0xee   :  { %v422_v29 = vpack.c.bf16 %v292_v25, %v292_v25 }
  0xef   :  { %210 = vst.msk [vmem:[#allocation2 + $0x24] sm:$0xf] %vm200_vm3, %v412_v28 }
  0xf0   :  { %345 = vst.msk [vmem:[%s681_s6 + $0x24] sm:$0xf] %vm335_vm4, %v422_v29 }
  0xf1   :  { %500 = shalt.err (!%p497_p4)
}
  0xf2   :  { %s514_s7 = smov 64   ;;  %s515_s8 = smov 4  }
  0xf3   :  { %357 = dma.vmem_to_hbm [thread:$0]  %s352_s1, 640, %s680_s5, [#allocation3], %s514_s7, %s514_s7, %s515_s8  }
  0xf4   :  { %509 = dma.done.wait [#allocation3], 640  }
  0xf5   :  { %510 = vsyncadd [#allocation3], 4294966656 }
  0xf6   :  { %365 = vsyncpa [#allocation3], 1 }

</bundles_post_ra>
